<compile_context>
chip_gen: v7x
topology: tpu7x:2x2x1
jax: 0.10.0
libtpu: 0.0.40
codegen_flags: <defaults>
</compile_context>

<pallas_src>
import functools

import jax
import jax.numpy as jnp
from jax.experimental import pallas as pl
from jax.experimental.pallas import tpu as pltpu


def _cdiv(a, b):
    return -(-a // b)


def _round_up(x, m):
    return _cdiv(x, m) * m


def _vmem_capacity_bytes():
    """Physical VMEM per core; conservative fallback if the query fails."""
    try:
        info = pltpu.get_tpu_info()
        for attr in ("vmem_capacity_bytes", "vmem_size_bytes", "vmem_bytes"):
            v = getattr(info, attr, None)
            if v:
                return int(v)
    except Exception:
        pass
    return 64 * 1024 * 1024  # v7x per-TensorCore VMEM (smallest of v5e/v6e/v7x)


def _pick_tiles(B, N, S, A, H, eps_itemsize, vmem_budget):
    """Choose (b_tile, B_pad, n_tile, n_chunks) under an explicit VMEM budget."""
    # Samples per grid step: largest divisor of N with a small unroll bound.
    n_tile = 1
    for d in range(min(N, 16), 0, -1):
        if N % d == 0:
            n_tile = d
            break
    n_chunks = N // n_tile

    if B <= 256:
        # Single full-batch tile: lane dim equals the full array dim (legal for
        # any B), and the per-tile VMEM footprint is trivially small.
        return B, B, n_tile, n_chunks

    # Bytes per batch column of one grid step (inputs double-buffered).
    per_col = (2 * n_tile * S * eps_itemsize        # eps block
               + 2 * 2 * S * 4                      # mean + std blocks
               + 2 * A * 4                          # actions block
               + H * 4                              # accumulator scratch
               + (n_tile * S + S + 3 * H) * 4)      # live f32 intermediates (rough)
    budget_cols = max(128, (vmem_budget // per_col) // 128 * 128)
    # Cap so the batch axis splits into >= 2 parallel tiles (v7x second TC).
    two_tc_cap = _round_up(_cdiv(B, 2), 128)
    cap = max(128, min(512, budget_cols, two_tc_cap))
    # Among legal lane-tile sizes (multiples of 128), minimize batch padding.
    best = None
    for cand in range(128, cap + 1, 128):
        pad = _round_up(B, cand)
        if best is None or pad < best[1] or (pad == best[1] and cand > best[0]):
            best = (cand, pad)
    b_tile, B_pad = best
    return b_tile, B_pad, n_tile, n_chunks


def learned_reward_kernel(mean_ref, std_ref, act_ref, eps_ref,
                          w1s_ref, w1a_ref, b1_ref, w2_ref, b2_ref,
                          out_ref, acc_ref, *, n_samples, n_tile):
    """One (batch-tile, sample-chunk) grid step; batch lives in lanes.

    mean/std: (S, Bt) f32; actions: (A, Bt) f32; eps: (1, n_tile*S, Bt) bf16/f32;
    w1s: (H, S); w1a: (H, A); b1: (H, 1); w2: (8, H) with row 0 = real head;
    b2: (1, 1).  acc_ref: (H, Bt) f32 running sum over samples, resident across
    the sample-chunk ("arbitrary") grid axis.
    """
    j = pl.program_id(1)
    S = mean_ref.shape[0]

    @pl.when(j == 0)
    def _init():
        acc_ref[...] = jnp.zeros_like(acc_ref)

    mean_t = mean_ref[...]
    std_t = std_ref[...]
    w1s_t = w1s_ref[...]
    # Per-batch action term + bias, recomputed per chunk (tiny K=A matmul).
    bias_t = jnp.dot(w1a_ref[...], act_ref[...],
                     preferred_element_type=jnp.float32) + b1_ref[...]

    # Static unroll over this chunk's samples: each iteration is one
    # (H, S) @ (S, Bt) MXU matmul accumulated into the VMEM scratch.
    for n in range(n_tile):
        eps_n = eps_ref[0, n * S:(n + 1) * S, :].astype(jnp.float32)  # (S, Bt)
        sampled_n = mean_t + std_t * eps_n
        h_n = jnp.dot(w1s_t, sampled_n,
                      preferred_element_type=jnp.float32) + bias_t
        acc_ref[...] += jnp.maximum(h_n, 0.0)

    @pl.when(j == pl.num_programs(1) - 1)
    def _finalize():
        h_mean = acc_ref[...] * jnp.float32(1.0 / n_samples)          # (H, Bt)
        # 1-wide head emitted as a lane-dense row: (8, H) @ (H, Bt), take row 0.
        r = jnp.dot(w2_ref[...], h_mean, preferred_element_type=jnp.float32)
        out_ref[...] = (r[0:1, :] + b2_ref[...]).astype(out_ref.dtype)


def learned_reward_forward(state_belief_mean, state_belief_covariance, actions,
                           eps, params):
    """Pallas forward of LearnedRewardModel.forward with an explicit eps draw.

    eps may be float32 or bfloat16 (upcast to f32 in-kernel). Returns (B, 1) f32.
    """
    B, S = state_belief_mean.shape
    _, A = actions.shape
    N = eps.shape[1]
    w1s, w1a, b1, w2, b2 = params
    H = w1s.shape[1]

    vmem_cap = _vmem_capacity_bytes()
    vmem_limit = int(vmem_cap * 3 // 4)
    b_tile, B_pad, n_tile, n_chunks = _pick_tiles(
        B, N, S, A, H, jnp.dtype(eps.dtype).itemsize, int(vmem_limit * 0.8))

    # --- wrapper-side layout plumbing (batch -> lanes, lane-dense eps) ---
    std = jnp.sqrt(jnp.maximum(
        jnp.diagonal(state_belief_covariance, axis1=1, axis2=2), 0.0))
    mean_t = state_belief_mean.T.astype(jnp.float32)           # (S, B)
    std_t = std.T.astype(jnp.float32)                          # (S, B)
    act_t = actions.T.astype(jnp.float32)                      # (A, B)
    # eps (B, N, S) -> (n_chunks, n_tile*S, B): sample-chunk major, batch in lanes.
    eps_t = eps.reshape(B, n_chunks, n_tile, S)
    eps_t = jnp.transpose(eps_t, (1, 2, 3, 0)).reshape(n_chunks, n_tile * S, B)

    if B_pad != B:
        pad2 = ((0, 0), (0, B_pad - B))
        mean_t = jnp.pad(mean_t, pad2)
        std_t = jnp.pad(std_t, pad2)
        act_t = jnp.pad(act_t, pad2)
        eps_t = jnp.pad(eps_t, ((0, 0), (0, 0), (0, B_pad - B)))

    # Transposed, lane-aligned parameters; head padded to 8 sublane rows.
    w1s_t = w1s.T.astype(jnp.float32)                          # (H, S)
    w1a_t = w1a.T.astype(jnp.float32)                          # (H, A)
    b1_t = b1.reshape(H, 1).astype(jnp.float32)                # (H, 1)
    w2_t8 = jnp.zeros((8, H), jnp.float32).at[0].set(w2.reshape(H).astype(jnp.float32))
    b2_2d = b2.reshape(1, 1).astype(jnp.float32)

    grid = (B_pad // b_tile, n_chunks)

    flops = (2 * B_pad * N * S * H              # first layer
             + 2 * B_pad * A * H * n_chunks     # action bias per chunk
             + 2 * B_pad * H * 8)               # (padded) head
    bytes_accessed = int(eps_t.size * eps_t.dtype.itemsize
                         + 4 * (mean_t.size + std_t.size + act_t.size
                                + w1s_t.size + w1a_t.size + b1_t.size
                                + w2_t8.size + 1 + B_pad))

    kernel = functools.partial(learned_reward_kernel,
                               n_samples=N, n_tile=n_tile)

    out = pl.pallas_call(
        kernel,
        out_shape=jax.ShapeDtypeStruct((1, B_pad), jnp.float32),
        grid_spec=pltpu.PrefetchScalarGridSpec(
            num_scalar_prefetch=0,
            grid=grid,
            in_specs=[
                pl.BlockSpec((S, b_tile), lambda i, j: (0, i)),                 # mean^T
                pl.BlockSpec((S, b_tile), lambda i, j: (0, i)),                 # std^T
                pl.BlockSpec((A, b_tile), lambda i, j: (0, i)),                 # actions^T
                pl.BlockSpec((1, n_tile * S, b_tile), lambda i, j: (j, 0, i)),  # eps
                pl.BlockSpec((H, S), lambda i, j: (0, 0)),                      # w1s^T
                pl.BlockSpec((H, A), lambda i, j: (0, 0)),                      # w1a^T
                pl.BlockSpec((H, 1), lambda i, j: (0, 0)),                      # b1
                pl.BlockSpec((8, H), lambda i, j: (0, 0)),                      # w2 rows
                pl.BlockSpec((1, 1), lambda i, j: (0, 0)),                      # b2
            ],
            out_specs=pl.BlockSpec((1, b_tile), lambda i, j: (0, i)),
            scratch_shapes=[pltpu.VMEM((H, b_tile), jnp.float32)],
        ),
        compiler_params=pltpu.CompilerParams(
            dimension_semantics=("parallel", "arbitrary"),
            vmem_limit_bytes=vmem_limit),
        cost_estimate=pl.CostEstimate(flops=flops, transcendentals=0,
                                      bytes_accessed=bytes_accessed),
    )(mean_t, std_t, act_t, eps_t, w1s_t, w1a_t, b1_t, w2_t8, b2_2d)

    return out[0, :B].reshape(B, 1)


def reference_forward(mean, cov, actions, eps, params):
    w1s, w1a, b1, w2, b2 = params
    std = jnp.sqrt(jnp.maximum(jnp.diagonal(cov, axis1=1, axis2=2), 0.0))
    sampled = mean[:, None, :] + std[:, None, :] * eps.astype(jnp.float32)
    h = jnp.maximum(
        jnp.einsum('bns,sh->bnh', sampled, w1s)
        + (actions @ w1a)[:, None, :] + b1[None, None, :], 0.0)
    r = jnp.einsum('bnh,ho->bno', h, w2) + b2[None, None, :]
    return jnp.mean(r, axis=1)


if __name__ == "__main__":
    B, S, A, H, N = 2, 16, 4, 32, 5   # batch, state_dim, action_dim, hidden, n_samples

    key = jax.random.PRNGKey(0)
    k_mean, k_cov, k_act, k_eps, k_w1, k_b1, k_w2, k_b2 = jax.random.split(key, 8)

    state_belief_mean = jax.random.normal(k_mean, (B, S), dtype=jnp.float32)
    # Build a PSD covariance so the diagonal (variances) is non-negative.
    L = jax.random.normal(k_cov, (B, S, S), dtype=jnp.float32) * 0.1
    state_belief_covariance = (jnp.einsum('bij,bkj->bik', L, L)
                               + 0.05 * jnp.eye(S, dtype=jnp.float32)[None])
    actions = jax.random.normal(k_act, (B, A), dtype=jnp.float32)

    # eps ~ N(0,1) (the torch.randn draw), streamed as bf16 to halve HBM bytes;
    # the reference consumes the identical bf16-quantized sample.
    eps = jax.random.normal(k_eps, (B, N, S), dtype=jnp.float32).astype(jnp.bfloat16)

    # Deterministic synthetic reward-model parameters (MLP: [S|A] -> H -> 1).
    w1 = jax.random.uniform(k_w1, (S + A, H), jnp.float32, -0.2, 0.2)
    w1s, w1a = w1[:S], w1[S:]
    b1 = jax.random.uniform(k_b1, (H,), jnp.float32, -0.2, 0.2)
    w2 = jax.random.uniform(k_w2, (H, 1), jnp.float32, -0.2, 0.2)
    b2 = jax.random.uniform(k_b2, (1,), jnp.float32, -0.2, 0.2)
    params = (w1s, w1a, b1, w2, b2)

    reward = learned_reward_forward(state_belief_mean, state_belief_covariance,
                                    actions, eps, params)
    jax.block_until_ready(reward)

    ref = reference_forward(state_belief_mean, state_belief_covariance,
                            actions, eps, params)
    assert reward.shape == (B, 1)
    assert jnp.allclose(reward, ref, atol=1e-5, rtol=1e-5), (
        float(jnp.max(jnp.abs(reward - ref))))
    print("KERNEL_OK")
</pallas_src>

<mosaic_0001>
module attributes {stable_mosaic.version = 11 : i64} {
  func.func @learned_reward_kernel(%arg0: i32, %arg1: i32, %arg2: memref<16x2xf32, #tpu.memory_space<vmem>>, %arg3: memref<16x2xf32, #tpu.memory_space<vmem>>, %arg4: memref<4x2xf32, #tpu.memory_space<vmem>>, %arg5: memref<1x80x2xbf16, #tpu.memory_space<vmem>>, %arg6: memref<32x16xf32, #tpu.memory_space<vmem>>, %arg7: memref<32x4xf32, #tpu.memory_space<vmem>>, %arg8: memref<32x1xf32, #tpu.memory_space<vmem>>, %arg9: memref<8x32xf32, #tpu.memory_space<vmem>>, %arg10: memref<1x1xf32, #tpu.memory_space<vmem>>, %arg11: memref<1x2xf32, #tpu.memory_space<vmem>>, %arg12: memref<32x2xf32, #tpu.memory_space<vmem>>) attributes {dimension_semantics = [#tpu.dimension_semantics<parallel>, #tpu.dimension_semantics<arbitrary>], iteration_bounds = array<i64: 1, 1>, scalar_prefetch = 0 : i64, scratch_operands = 1 : i64, tpu.core_type = #tpu.core_type<tc>, window_params = [{transform_indices = @transform_0, window_bounds = array<i64: 16, 2>}, {transform_indices = @transform_1, window_bounds = array<i64: 16, 2>}, {transform_indices = @transform_2, window_bounds = array<i64: 4, 2>}, {transform_indices = @transform_3, window_bounds = array<i64: 1, 80, 2>}, {pipeline_mode = #tpu.pipeline_mode<synchronous>, transform_indices = @transform_4, window_bounds = array<i64: 32, 16>}, {pipeline_mode = #tpu.pipeline_mode<synchronous>, transform_indices = @transform_5, window_bounds = array<i64: 32, 4>}, {pipeline_mode = #tpu.pipeline_mode<synchronous>, transform_indices = @transform_6, window_bounds = array<i64: 32, 1>}, {pipeline_mode = #tpu.pipeline_mode<synchronous>, transform_indices = @transform_7, window_bounds = array<i64: 8, 32>}, {pipeline_mode = #tpu.pipeline_mode<synchronous>, transform_indices = @transform_8, window_bounds = array<i64: 1, 1>}, {transform_indices = @transform_9, window_bounds = array<i64: 1, 2>}]} {
    %c0_i32 = arith.constant 0 : i32
    %0 = arith.cmpi eq, %arg1, %c0_i32 : i32
    %1 = arith.extui %0 : i1 to i32
    %c0_i32_0 = arith.constant 0 : i32
    %2 = arith.cmpi ne, %1, %c0_i32_0 : i32
    scf.if %2 {
      %cst_55 = arith.constant 0.000000e+00 : f32
      %75 = vector.broadcast %cst_55 : f32 to vector<32x2xf32>
      %c0_56 = arith.constant 0 : index
      %c0_57 = arith.constant 0 : index
      %76 = vector.load %arg12[%c0_56, %c0_57] : memref<32x2xf32, #tpu.memory_space<vmem>>, vector<32x2xf32>
      tpu.vector_store %arg12[%c0_56, %c0_57], %75 {strides = array<i32>} : memref<32x2xf32, #tpu.memory_space<vmem>>, vector<32x2xf32>,
    } else {
    }
    %c0 = arith.constant 0 : index
    %c0_1 = arith.constant 0 : index
    %3 = vector.load %arg2[%c0, %c0_1] : memref<16x2xf32, #tpu.memory_space<vmem>>, vector<16x2xf32>
    %c0_2 = arith.constant 0 : index
    %c0_3 = arith.constant 0 : index
    %4 = vector.load %arg3[%c0_2, %c0_3] : memref<16x2xf32, #tpu.memory_space<vmem>>, vector<16x2xf32>
    %c0_4 = arith.constant 0 : index
    %c0_5 = arith.constant 0 : index
    %5 = vector.load %arg6[%c0_4, %c0_5] : memref<32x16xf32, #tpu.memory_space<vmem>>, vector<32x16xf32>
    %c0_6 = arith.constant 0 : index
    %c0_7 = arith.constant 0 : index
    %6 = vector.load %arg7[%c0_6, %c0_7] : memref<32x4xf32, #tpu.memory_space<vmem>>, vector<32x4xf32>
    %c0_8 = arith.constant 0 : index
    %c0_9 = arith.constant 0 : index
    %7 = vector.load %arg4[%c0_8, %c0_9] : memref<4x2xf32, #tpu.memory_space<vmem>>, vector<4x2xf32>
    %cst = arith.constant dense<0.000000e+00> : vector<32x2xf32>
    %8 = tpu.matmul %6, %7, %cst {dimension_numbers = #tpu.dot_dimension_numbers<[1], [0], [0], [1], [0, 0, 1, 1], [], []>} : vector<32x4xf32>, vector<4x2xf32>, vector<32x2xf32> -> vector<32x2xf32>
    %c0_10 = arith.constant 0 : index
    %c0_11 = arith.constant 0 : index
    %9 = vector.load %arg8[%c0_10, %c0_11] : memref<32x1xf32, #tpu.memory_space<vmem>>, vector<32x1xf32>
    %10 = vector.broadcast %9 : vector<32x1xf32> to vector<32x2xf32>
    %11 = arith.addf %8, %10 : vector<32x2xf32>
    %c0_12 = arith.constant 0 : index
    %c0_13 = arith.constant 0 : index
    %c0_14 = arith.constant 0 : index
    %12 = vector.load %arg5[%c0_12, %c0_13, %c0_14] : memref<1x80x2xbf16, #tpu.memory_space<vmem>>, vector<1x16x2xbf16>
    %13 = vector.shape_cast %12 : vector<1x16x2xbf16> to vector<16x2xbf16>
    %14 = arith.extf %13 : vector<16x2xbf16> to vector<16x2xf32>
    %15 = arith.mulf %4, %14 : vector<16x2xf32>
    %16 = arith.addf %3, %15 : vector<16x2xf32>
    %cst_15 = arith.constant dense<0.000000e+00> : vector<32x2xf32>
    %17 = tpu.matmul %5, %16, %cst_15 {dimension_numbers = #tpu.dot_dimension_numbers<[1], [0], [0], [1], [0, 0, 1, 1], [], []>} : vector<32x16xf32>, vector<16x2xf32>, vector<32x2xf32> -> vector<32x2xf32>
    %18 = arith.addf %17, %11 : vector<32x2xf32>
    %c0_16 = arith.constant 0 : index
    %c0_17 = arith.constant 0 : index
    %19 = vector.load %arg12[%c0_16, %c0_17] : memref<32x2xf32, #tpu.memory_space<vmem>>, vector<32x2xf32>
    %cst_18 = arith.constant 0.000000e+00 : f32
    %20 = vector.broadcast %cst_18 : f32 to vector<32x2xf32>
    %21 = arith.maximumf %18, %20 : vector<32x2xf32>
    %22 = arith.addf %19, %21 : vector<32x2xf32>
    %c0_19 = arith.constant 0 : index
    %c0_20 = arith.constant 0 : index
    %23 = vector.load %arg12[%c0_19, %c0_20] : memref<32x2xf32, #tpu.memory_space<vmem>>, vector<32x2xf32>
    tpu.vector_store %arg12[%c0_19, %c0_20], %22 {strides = array<i32>} : memref<32x2xf32, #tpu.memory_space<vmem>>, vector<32x2xf32>,
    %c0_21 = arith.constant 0 : index
    %c16 = arith.constant 16 : index
    %c0_22 = arith.constant 0 : index
    %24 = vector.load %arg5[%c0_21, %c16, %c0_22] : memref<1x80x2xbf16, #tpu.memory_space<vmem>>, vector<1x16x2xbf16>
    %25 = vector.shape_cast %24 : vector<1x16x2xbf16> to vector<16x2xbf16>
    %26 = arith.extf %25 : vector<16x2xbf16> to vector<16x2xf32>
    %27 = arith.mulf %4, %26 : vector<16x2xf32>
    %28 = arith.addf %3, %27 : vector<16x2xf32>
    %cst_23 = arith.constant dense<0.000000e+00> : vector<32x2xf32>
    %29 = tpu.matmul %5, %28, %cst_23 {dimension_numbers = #tpu.dot_dimension_numbers<[1], [0], [0], [1], [0, 0, 1, 1], [], []>} : vector<32x16xf32>, vector<16x2xf32>, vector<32x2xf32> -> vector<32x2xf32>
    %30 = arith.addf %29, %11 : vector<32x2xf32>
    %c0_24 = arith.constant 0 : index
    %c0_25 = arith.constant 0 : index
    %31 = vector.load %arg12[%c0_24, %c0_25] : memref<32x2xf32, #tpu.memory_space<vmem>>, vector<32x2xf32>
    %cst_26 = arith.constant 0.000000e+00 : f32
    %32 = vector.broadcast %cst_26 : f32 to vector<32x2xf32>
    %33 = arith.maximumf %30, %32 : vector<32x2xf32>
    %34 = arith.addf %31, %33 : vector<32x2xf32>
    %c0_27 = arith.constant 0 : index
    %c0_28 = arith.constant 0 : index
    %35 = vector.load %arg12[%c0_27, %c0_28] : memref<32x2xf32, #tpu.memory_space<vmem>>, vector<32x2xf32>
    tpu.vector_store %arg12[%c0_27, %c0_28], %34 {strides = array<i32>} : memref<32x2xf32, #tpu.memory_space<vmem>>, vector<32x2xf32>,
    %c0_29 = arith.constant 0 : index
    %c32 = arith.constant 32 : index
    %c0_30 = arith.constant 0 : index
    %36 = vector.load %arg5[%c0_29, %c32, %c0_30] : memref<1x80x2xbf16, #tpu.memory_space<vmem>>, vector<1x16x2xbf16>
    %37 = vector.shape_cast %36 : vector<1x16x2xbf16> to vector<16x2xbf16>
    %38 = arith.extf %37 : vector<16x2xbf16> to vector<16x2xf32>
    %39 = arith.mulf %4, %38 : vector<16x2xf32>
    %40 = arith.addf %3, %39 : vector<16x2xf32>
    %cst_31 = arith.constant dense<0.000000e+00> : vector<32x2xf32>
    %41 = tpu.matmul %5, %40, %cst_31 {dimension_numbers = #tpu.dot_dimension_numbers<[1], [0], [0], [1], [0, 0, 1, 1], [], []>} : vector<32x16xf32>, vector<16x2xf32>, vector<32x2xf32> -> vector<32x2xf32>
    %42 = arith.addf %41, %11 : vector<32x2xf32>
    %c0_32 = arith.constant 0 : index
    %c0_33 = arith.constant 0 : index
    %43 = vector.load %arg12[%c0_32, %c0_33] : memref<32x2xf32, #tpu.memory_space<vmem>>, vector<32x2xf32>
    %cst_34 = arith.constant 0.000000e+00 : f32
    %44 = vector.broadcast %cst_34 : f32 to vector<32x2xf32>
    %45 = arith.maximumf %42, %44 : vector<32x2xf32>
    %46 = arith.addf %43, %45 : vector<32x2xf32>
    %c0_35 = arith.constant 0 : index
    %c0_36 = arith.constant 0 : index
    %47 = vector.load %arg12[%c0_35, %c0_36] : memref<32x2xf32, #tpu.memory_space<vmem>>, vector<32x2xf32>
    tpu.vector_store %arg12[%c0_35, %c0_36], %46 {strides = array<i32>} : memref<32x2xf32, #tpu.memory_space<vmem>>, vector<32x2xf32>,
    %c0_37 = arith.constant 0 : index
    %c48 = arith.constant 48 : index
    %c0_38 = arith.constant 0 : index
    %48 = vector.load %arg5[%c0_37, %c48, %c0_38] : memref<1x80x2xbf16, #tpu.memory_space<vmem>>, vector<1x16x2xbf16>
    %49 = vector.shape_cast %48 : vector<1x16x2xbf16> to vector<16x2xbf16>
    %50 = arith.extf %49 : vector<16x2xbf16> to vector<16x2xf32>
    %51 = arith.mulf %4, %50 : vector<16x2xf32>
    %52 = arith.addf %3, %51 : vector<16x2xf32>
    %cst_39 = arith.constant dense<0.000000e+00> : vector<32x2xf32>
    %53 = tpu.matmul %5, %52, %cst_39 {dimension_numbers = #tpu.dot_dimension_numbers<[1], [0], [0], [1], [0, 0, 1, 1], [], []>} : vector<32x16xf32>, vector<16x2xf32>, vector<32x2xf32> -> vector<32x2xf32>
    %54 = arith.addf %53, %11 : vector<32x2xf32>
    %c0_40 = arith.constant 0 : index
    %c0_41 = arith.constant 0 : index
    %55 = vector.load %arg12[%c0_40, %c0_41] : memref<32x2xf32, #tpu.memory_space<vmem>>, vector<32x2xf32>
    %cst_42 = arith.constant 0.000000e+00 : f32
    %56 = vector.broadcast %cst_42 : f32 to vector<32x2xf32>
    %57 = arith.maximumf %54, %56 : vector<32x2xf32>
    %58 = arith.addf %55, %57 : vector<32x2xf32>
    %c0_43 = arith.constant 0 : index
    %c0_44 = arith.constant 0 : index
    %59 = vector.load %arg12[%c0_43, %c0_44] : memref<32x2xf32, #tpu.memory_space<vmem>>, vector<32x2xf32>
    tpu.vector_store %arg12[%c0_43, %c0_44], %58 {strides = array<i32>} : memref<32x2xf32, #tpu.memory_space<vmem>>, vector<32x2xf32>,
    %c0_45 = arith.constant 0 : index
    %c64 = arith.constant 64 : index
    %c0_46 = arith.constant 0 : index
    %60 = vector.load %arg5[%c0_45, %c64, %c0_46] : memref<1x80x2xbf16, #tpu.memory_space<vmem>>, vector<1x16x2xbf16>
    %61 = vector.shape_cast %60 : vector<1x16x2xbf16> to vector<16x2xbf16>
    %62 = arith.extf %61 : vector<16x2xbf16> to vector<16x2xf32>
    %63 = arith.mulf %4, %62 : vector<16x2xf32>
    %64 = arith.addf %3, %63 : vector<16x2xf32>
    %cst_47 = arith.constant dense<0.000000e+00> : vector<32x2xf32>
    %65 = tpu.matmul %5, %64, %cst_47 {dimension_numbers = #tpu.dot_dimension_numbers<[1], [0], [0], [1], [0, 0, 1, 1], [], []>} : vector<32x16xf32>, vector<16x2xf32>, vector<32x2xf32> -> vector<32x2xf32>
    %66 = arith.addf %65, %11 : vector<32x2xf32>
    %c0_48 = arith.constant 0 : index
    %c0_49 = arith.constant 0 : index
    %67 = vector.load %arg12[%c0_48, %c0_49] : memref<32x2xf32, #tpu.memory_space<vmem>>, vector<32x2xf32>
    %cst_50 = arith.constant 0.000000e+00 : f32
    %68 = vector.broadcast %cst_50 : f32 to vector<32x2xf32>
    %69 = arith.maximumf %66, %68 : vector<32x2xf32>
    %70 = arith.addf %67, %69 : vector<32x2xf32>
    %c0_51 = arith.constant 0 : index
    %c0_52 = arith.constant 0 : index
    %71 = vector.load %arg12[%c0_51, %c0_52] : memref<32x2xf32, #tpu.memory_space<vmem>>, vector<32x2xf32>
    tpu.vector_store %arg12[%c0_51, %c0_52], %70 {strides = array<i32>} : memref<32x2xf32, #tpu.memory_space<vmem>>, vector<32x2xf32>,
    %c0_i32_53 = arith.constant 0 : i32
    %72 = arith.cmpi eq, %arg1, %c0_i32_53 : i32
    %73 = arith.extui %72 : i1 to i32
    %c0_i32_54 = arith.constant 0 : i32
    %74 = arith.cmpi ne, %73, %c0_i32_54 : i32
    scf.if %74 {
      %c0_55 = arith.constant 0 : index
      %c0_56 = arith.constant 0 : index
      %75 = vector.load %arg12[%c0_55, %c0_56] : memref<32x2xf32, #tpu.memory_space<vmem>>, vector<32x2xf32>
      %cst_57 = arith.constant 2.000000e-01 : f32
      %76 = vector.broadcast %cst_57 : f32 to vector<32x2xf32>
      %77 = arith.mulf %75, %76 : vector<32x2xf32>
      %c0_58 = arith.constant 0 : index
      %c0_59 = arith.constant 0 : index
      %78 = vector.load %arg9[%c0_58, %c0_59] : memref<8x32xf32, #tpu.memory_space<vmem>>, vector<8x32xf32>
      %cst_60 = arith.constant dense<0.000000e+00> : vector<8x2xf32>
      %79 = tpu.matmul %78, %77, %cst_60 {dimension_numbers = #tpu.dot_dimension_numbers<[1], [0], [0], [1], [0, 0, 1, 1], [], []>} : vector<8x32xf32>, vector<32x2xf32>, vector<8x2xf32> -> vector<8x2xf32>
      %80 = vector.extract_strided_slice %79 {offsets = [0, 0], sizes = [1, 2], strides = [1, 1]} : vector<8x2xf32> to vector<1x2xf32>
      %c0_61 = arith.constant 0 : index
      %c0_62 = arith.constant 0 : index
      %81 = vector.load %arg10[%c0_61, %c0_62] : memref<1x1xf32, #tpu.memory_space<vmem>>, vector<1x1xf32>
      %82 = vector.broadcast %81 : vector<1x1xf32> to vector<1x2xf32>
      %83 = arith.addf %80, %82 : vector<1x2xf32>
      %c0_63 = arith.constant 0 : index
      %c0_64 = arith.constant 0 : index
      %84 = vector.load %arg11[%c0_63, %c0_64] : memref<1x2xf32, #tpu.memory_space<vmem>>, vector<1x2xf32>
      tpu.vector_store %arg11[%c0_63, %c0_64], %83 {strides = array<i32>} : memref<1x2xf32, #tpu.memory_space<vmem>>, vector<1x2xf32>,
    } else {
    }
    return
  }
  func.func @transform_0(%arg0: i32, %arg1: i32) -> (i32, i32) {
    %c0_i32 = arith.constant 0 : i32
    %c0_i32_0 = arith.constant 0 : i32
    return %c0_i32, %arg0 : i32, i32
  }
  func.func @transform_1(%arg0: i32, %arg1: i32) -> (i32, i32) {
    %c0_i32 = arith.constant 0 : i32
    %c0_i32_0 = arith.constant 0 : i32
    return %c0_i32, %arg0 : i32, i32
  }
  func.func @transform_2(%arg0: i32, %arg1: i32) -> (i32, i32) {
    %c0_i32 = arith.constant 0 : i32
    %c0_i32_0 = arith.constant 0 : i32
    return %c0_i32, %arg0 : i32, i32
  }
  func.func @transform_3(%arg0: i32, %arg1: i32) -> (i32, i32, i32) {
    %c0_i32 = arith.constant 0 : i32
    %c0_i32_0 = arith.constant 0 : i32
    return %arg1, %c0_i32, %arg0 : i32, i32, i32
  }
  func.func @transform_4(%arg0: i32, %arg1: i32) -> (i32, i32) {
    %c0_i32 = arith.constant 0 : i32
    %c0_i32_0 = arith.constant 0 : i32
    %c0_i32_1 = arith.constant 0 : i32
    return %c0_i32, %c0_i32_0 : i32, i32
  }
  func.func @transform_5(%arg0: i32, %arg1: i32) -> (i32, i32) {
    %c0_i32 = arith.constant 0 : i32
    %c0_i32_0 = arith.constant 0 : i32
    %c0_i32_1 = arith.constant 0 : i32
    return %c0_i32, %c0_i32_0 : i32, i32
  }
  func.func @transform_6(%arg0: i32, %arg1: i32) -> (i32, i32) {
    %c0_i32 = arith.constant 0 : i32
    %c0_i32_0 = arith.constant 0 : i32
    %c0_i32_1 = arith.constant 0 : i32
    return %c0_i32, %c0_i32_0 : i32, i32
  }
  func.func @transform_7(%arg0: i32, %arg1: i32) -> (i32, i32) {
    %c0_i32 = arith.constant 0 : i32
    %c0_i32_0 = arith.constant 0 : i32
    %c0_i32_1 = arith.constant 0 : i32
    return %c0_i32, %c0_i32_0 : i32, i32
  }
  func.func @transform_8(%arg0: i32, %arg1: i32) -> (i32, i32) {
    %c0_i32 = arith.constant 0 : i32
    %c0_i32_0 = arith.constant 0 : i32
    %c0_i32_1 = arith.constant 0 : i32
    return %c0_i32, %c0_i32_0 : i32, i32
  }
  func.func @transform_9(%arg0: i32, %arg1: i32) -> (i32, i32) {
    %c0_i32 = arith.constant 0 : i32
    %c0_i32_0 = arith.constant 0 : i32
    return %c0_i32, %arg0 : i32, i32
  }
}

</mosaic_0001>

<bundles_post_ra>
// kernel: tpu_custom_call.1
= control target key start
LH: loop header
LB: loop body
LE: loop exit
PB: predicated region body
PF: predicated region fallthrough
CT: control target
= control target key end

     0   :  { %s1274_s0 = inlined_call_operand.vmem [shape: f32[16,2], index: 0, kind: input, shape index: {}]   ;;  %s1275_s1 = inlined_call_operand.vmem [shape: f32[16,2], index: 1, kind: input, shape index: {}]   ;;  %s1276_s2 = inlined_call_operand.vmem [shape: f32[4,2], index: 2, kind: input, shape index: {}]   ;;  %s1277_s3 = inlined_call_operand.vmem [shape: bf16[1,80,2], index: 3, kind: input, shape index: {}]   ;;  %s1278_s4 = inlined_call_operand.vmem [shape: f32[32,16], index: 4, kind: input, shape index: {}]   ;;  %s1279_s5 = inlined_call_operand.vmem [shape: f32[32,4], index: 5, kind: input, shape index: {}]   ;;  %s1280_s6 = inlined_call_operand.vmem [shape: f32[32,1], index: 6, kind: input, shape index: {}]   ;;  %s1281_s7 = inlined_call_operand.vmem [shape: f32[8,32], index: 7, kind: input, shape index: {}]   ;;  %s1282_s8 = inlined_call_operand.<no memory space> [shape: f32[1,1], index: 8, kind: input, shape index: {}]   ;;  %s1283_s9 = inlined_call_operand.hbm [shape: f32[1,2], index: 9, kind: output, shape index: {}]  }
   0x1   :  { %v14_v0 = vstv %s1282_s8 }
   0x2   :  { %15 = vst [vmem:[#allocation3] sm:$0x1] %v14_v0 }
   0x3   :  { %v56_v1 = vld [vmem:[%s1276_s2] sm:$0xf]  ;;  %vm94_vm0 = vcmask 1043456   ;;  %vm81_vm1 = vcmask 31744   ;;  %v53_v3 = vld [vmem:[%s1279_s5 + $0x8] sm:$0xff]  ;;  %v54_v4 = vld [vmem:[%s1279_s5 + $0x10] sm:$0xff] }
   0x4   :  { %v52_v2 = vld [vmem:[%s1279_s5] sm:$0xff]  ;;  %945 = vmatprep.subr.msk.mxu0 %vm94_vm0, %v56_v1  ;;  %vm191_vm2 = vcmask 130048   ;;  %v47_v6 = vld [vmem:[%s1275_s1 + $0x8] sm:$0xff]  ;;  %v1071_v7 = vmov 0   ;;  %v55_v11 = vld [vmem:[%s1279_s5 + $0x18] sm:$0xff] }
   0x5   :  { %947 = vmatprep.mubr.msk.f32.mxu0 %vm81_vm1, %v52_v2  ;;  %946 = vmatpush3.msk.msra.mxu0 %vm94_vm0, %v56_v1  ;;  %v46_v5 = vld [vmem:[%s1275_s1] sm:$0xff]  ;;  %v901_v9 = vld [vmem:[%s1277_s3 + $0x8] sm:$0xff]   ;;  %v902_v18 = vld [vmem:[%s1277_s3 + $0x10] sm:$0xff]  }
   0x6   :  { %1045 = vset.pattern.permute.xlu0 %v1071_v7  ;;  %948 = vmatmul.mubr.msk.f32.vlgmr.msra.gmra.mrb[0].mxu0 %vm81_vm1, %v53_v3  ;;  %v882_v8 = vld [vmem:[%s1277_s3] sm:$0xff]   ;;  %v887_v15 = vunpack.c.l.bf16 %v901_v9  ;;  %v888_v16 = vunpack.c.h.bf16 %v901_v9  ;;  %v45_v17 = vld [vmem:[%s1274_s0 + $0x8] sm:$0xff]  ;;  %v903_v19 = vld [vmem:[%s1277_s3 + $0x18] sm:$0xff]   ;;  %v891_v26 = vunpack.c.l.bf16 %v902_v18  ;;  %v892_v27 = vunpack.c.h.bf16 %v902_v18 }
   0x7   :  { %v1158_v10 = vld [vmem:[%s1278_s4] sm:$0xff]  ;;  %1046 = vset.pattern.permute.xlu1 %v1071_v7  ;;  %950 = vmatprep.mubr.msk.f32.mxu0 %vm81_vm1, %v54_v4  ;;  %v883_v13 = vunpack.c.l.bf16 %v882_v8  ;;  %v884_v14 = vunpack.c.h.bf16 %v882_v8  ;;  %v59_v25 = vld [vmem:[%s1280_s6 + $0x10] sm:$0xff]  ;;  %v895_v28 = vunpack.c.l.bf16 %v903_v19  ;;  %v896_v29 = vunpack.c.h.bf16 %v903_v19 }
   0x8   :  { %v44_v12 = vld [vmem:[%s1274_s0] sm:$0xff]  ;;  %957 = vmatprep.mubr.msk.f32.mxu1 %vm191_vm2, %v1158_v10  ;;  %v310_v22 = vmul.f32 %v887_v15, %v46_v5  ;;  %v311_v23 = vmul.f32 %v888_v16, %v47_v6 }
   0x9   :  { %v187_v20 = vmul.f32 %v883_v13, %v46_v5  ;;  %v188_v21 = vmul.f32 %v884_v14, %v47_v6  ;;  %v57_v24 = vld [vmem:[%s1280_s6] sm:$0xff] }
   0xa   :  { %951 = vmatmul.mubr.msk.f32.gmra.mrb[2].mxu0 %vm81_vm1, %v55_v11  ;;  %v904_v30 = vld [vmem:[%s1277_s3 + $0x20] sm:$0xff]   ;;  %63 = vperm.xlu0 %1045, %v57_v24  }
   0xb   :  { %16 = vsyncpa [#allocation5], 0  ;;  %v189_v31 = vadd.f32 %v187_v20, %v44_v12  ;;  %v190_v32 = vadd.f32 %v188_v21, %v45_v17  ;;  %v312_v33 = vadd.f32 %v310_v22, %v44_v12  ;;  %v313_v34 = vadd.f32 %v311_v23, %v45_v17  ;;  %967 = vmatprep.mubr.msk.f32.mxu0 %vm191_vm2, %v1158_v10  ;;  %v58_v35 = vld [vmem:[%s1280_s6 + $0x8] sm:$0xff]  ;;  %v60_v48 = vld [vmem:[%s1280_s6 + $0x18] sm:$0xff]  ;;  %s1075_s26 = smov [#allocation4]  }
   0xc   :  { %v419_v36 = vmul.f32 %v891_v26, %v46_v5  ;;  %v420_v37 = vmul.f32 %v892_v27, %v47_v6  ;;  %v528_v38 = vmul.f32 %v895_v28, %v46_v5  ;;  %v529_v39 = vmul.f32 %v896_v29, %v47_v6  ;;  %73 = vperm.xlu1 %1046, %v59_v25   ;;  %v49_v51 = vld [vmem:[%s1278_s4 + $0x8] sm:$0xff]  ;;  %v50_v54 = vld [vmem:[%s1278_s4 + $0x10] sm:$0xff]  ;;  %v828_v58 = vld [vmem:[#allocation3] sm:$0x1]  ;;  %s847_s1 = sshll.u32 %s1075_s26, 4  ;;  %s848_s1 = int_to_ptr.vmem [resolvable:$true] %s847_s1 }
   0xd   :  { %v1014_v40 = vpack.c.bf16 %v190_v32, %v189_v31  ;;  %v1018_v41 = vpack.c.bf16 %v313_v34, %v312_v33  ;;  %v899_v42 = vunpack.c.l.bf16 %v904_v30  ;;  %v900_v43 = vunpack.c.h.bf16 %v904_v30  ;;  %v51_v59 = vld [vmem:[%s1278_s4 + $0x18] sm:$0xff]  ;;  %s1047_s27 = scalar_lea.vmem %s848_s1, 16  ;;  %s1051_s28 = scalar_lea.vmem %s848_s1, 32 }
   0xe   :  { %v421_v44 = vadd.f32 %v419_v36, %v44_v12  ;;  %v422_v45 = vadd.f32 %v420_v37, %v45_v17  ;;  %v530_v46 = vadd.f32 %v528_v38, %v44_v12  ;;  %v531_v47 = vadd.f32 %v529_v39, %v45_v17  ;;  %68 = vperm.xlu0 %1045, %v58_v35   ;;  %p1048_p0 = scmp.ne.s32.totalorder %s848_s1, %s1047_s27  ;;  %p1052_p1 = scmp.lt.s32.totalorder %s848_s1, %s848_s1 }
   0xf   :  { %1015 = vmatprep.subr.bf16.mxu1 %v1014_v40  ;;  %1019 = vmatprep.subr.bf16.mxu0 %v1018_v41  ;;  %v637_v49 = vmul.f32 %v899_v42, %v46_v5  ;;  %v638_v50 = vmul.f32 %v900_v43, %v47_v6  ;;  %vm39_vm3 = vcmask 15360   ;;  %v1072_v60 = vmov 0.0   ;;  %p1053_p2 = scmp.lt.s32.totalorder %s1051_s28, %s1047_s27 }
  0x10   :  { %1017 = vmatpush3.bf16.msra.mxu1 %v1014_v40  ;;  %1021 = vmatpush3.bf16.msra.mxu0 %v1018_v41  ;;  %v1022_v52 = vpack.c.bf16 %v422_v45, %v421_v44  ;;  %v1026_v53 = vpack.c.bf16 %v531_v47, %v530_v46  ;;  %41 = vst.msk [vmem:[#allocation2 + $0x8] sm:$0xff] %vm39_vm3, %v1072_v60  ;;  %40 = vst.msk [vmem:[#allocation2] sm:$0xff] %vm39_vm3, %v1072_v60  ;;  %v1073_v61 = vmov 0.0|0.0   ;;  %vm1074_vm4 = vmmov 0  }
  0x11   :  { %v639_v55 = vadd.f32 %v637_v49, %v44_v12  ;;  %v640_v56 = vadd.f32 %v638_v50, %v45_v17  ;;  %78 = vperm.xlu1 %1046, %v60_v48   ;;  %42 = vst.msk [vmem:[#allocation2 + $0x10] sm:$0xff] %vm39_vm3, %v1072_v60  ;;  %43 = vst.msk [vmem:[#allocation2 + $0x18] sm:$0xff] %vm39_vm3, %v1072_v60  ;;  %vm754_vm5 = vcmask 261120   ;;  %vm839_vm6 = vcmask 8192   ;;  %p1054_p3 = por %p1053_p2, %p1052_p1 }
  0x12   :  { %1023 = vmatprep.subr.bf16.mxu1 %v1022_v52  ;;  %1027 = vmatprep.subr.bf16.mxu0 %v1026_v53 }
  0x13   :  { %958 = vmatmul.mubr.msk.f32.vlgmr.msra.gmra.mrb[0].mxu1 %vm191_vm2, %v49_v51  ;;  %968 = vmatmul.mubr.msk.f32.vlgmr.msra.gmra.mrb[4].mxu0 %vm191_vm2, %v49_v51  ;;  %v1030_v57 = vpack.c.bf16 %v640_v56, %v639_v55  ;;  %p1055_p4 = pnand %p1054_p3, %p1048_p0 }
  0x14   :  { %960 = vmatprep.mubr.msk.f32.mxu1 %vm191_vm2, %v50_v54  ;;  %970 = vmatprep.mubr.msk.f32.mxu0 %vm191_vm2, %v50_v54 }
  0x15   :  { %1025 = vmatpush3.bf16.msra.mxu1 %v1022_v52  ;;  %1029 = vmatpush3.bf16.msra.mxu0 %v1026_v53 }
  0x16   :  { %1031 = vmatprep.subr.bf16.mxu1 %v1030_v57  ;;  %831 = vperm.xlu0 %1045, %v828_v58  }
  0x17   :  { %961 = vmatmul.mubr.msk.f32.gmra.mrb[2].mxu1 %vm191_vm2, %v51_v59  ;;  %971 = vmatmul.mubr.msk.f32.gmra.mrb[6].mxu0 %vm191_vm2, %v51_v59  ;;  %v290_v14 = vld [vmem:[#allocation2 + $0x8] sm:$0xff]  ;;  %v289_v19 = vld [vmem:[#allocation2] sm:$0xff] }
  0x18   :  { %977 = vmatprep.mubr.msk.f32.mxu1 %vm191_vm2, %v1158_v10  ;;  %987 = vmatprep.mubr.msk.f32.mxu0 %vm191_vm2, %v1158_v10  ;;  %v292_v30 = vld [vmem:[#allocation2 + $0x18] sm:$0xff]  ;;  %v291_v34 = vld [vmem:[#allocation2 + $0x10] sm:$0xff] }
  0x19   :  { %1034 = vmatprep.subr.bf16.mxu0 %v1073_v61 }
  0x1b   :  { %978 = vmatmul.mubr.msk.f32.vlgmr.msra.gmra.mrb[4].mxu1 %vm191_vm2, %v49_v51  ;;  %988 = vmatmul.mubr.msk.f32.vlgmr.msra.gmra.mrb[8].mxu0 %vm191_vm2, %v49_v51 }
  0x1c   :  { %980 = vmatprep.mubr.msk.f32.mxu1 %vm191_vm2, %v50_v54  ;;  %990 = vmatprep.mubr.msk.f32.mxu0 %vm191_vm2, %v50_v54 }
  0x1d   :  { %1033 = vmatpush3.bf16.msra.mxu1 %v1030_v57 }
  0x1f   :  { %981 = vmatmul.mubr.msk.f32.gmra.mrb[6].mxu1 %vm191_vm2, %v51_v59  ;;  %991 = vmatmul.mubr.msk.f32.gmra.mrb[10].mxu0 %vm191_vm2, %v51_v59 }
  0x20   :  { %997 = vmatprep.mubr.msk.f32.mxu1 %vm191_vm2, %v1158_v10  ;;  %1011 = vmatprep.mubr.msk.f32.mxu0 %vm1074_vm4, %v1072_v60 }
  0x23   :  { %998 = vmatmul.mubr.msk.f32.vlgmr.msra.gmra.mrb[8].mxu1 %vm191_vm2, %v49_v51 }
  0x24   :  { %1000 = vmatprep.mubr.msk.f32.mxu1 %vm191_vm2, %v50_v54 }
  0x27   :  { %1001 = vmatmul.mubr.msk.f32.gmra.mrb[10].mxu1 %vm191_vm2, %v51_v59 }
  0x89   :  { %v64_v1 = vpop.permute.xlu0 %63 }
  0x8b   :  { %v74_v3 = vpop.permute.xlu1 %73 }
  0x8d   :  { %v69_v4 = vpop.permute.xlu0 %68 }
  0x90   :  { %v79_v6 = vpop.permute.xlu1 %78 }
  0xd9   :  { %v949_v62 = vpop.f32.mrb[0].mxu0 }
  0xda   :  { %v164_v63 = vpop.f32.mrb[1].mxu0  ;;  %v170_v5 = vadd.f32 %v949_v62, %v69_v4 }
  0xdb   :  { %v1231_v7 = vadd.f32 %v164_v63, %v64_v1 }
  0xdd   :  { %v952_v0 = vpop.f32.mrb[2].mxu0 }
  0xde   :  { %v174_v2 = vpop.f32.mrb[3].mxu0  ;;  %v180_v17 = vadd.f32 %v952_v0, %v79_v6 }
  0xdf   :  { %v175_v20 = vadd.f32 %v174_v2, %v74_v3 }
  0xe6   :  { %v959_v8 = vpop.f32.mrb[0].mxu1  ;;  %v969_v9 = vpop.f32.mrb[4].mxu0 }
  0xe7   :  { %v276_v10 = vadd.f32 %v959_v8, %v170_v5  ;;  %v386_v11 = vadd.f32 %v969_v9, %v170_v5  ;;  %v270_v12 = vpop.f32.mrb[1].mxu1  ;;  %v380_v13 = vpop.f32.mrb[5].mxu0 }
  0xe8   :  { %v271_v15 = vadd.f32 %v270_v12, %v1231_v7  ;;  %v381_v16 = vadd.f32 %v380_v13, %v1231_v7 }
  0xe9   :  { %v294_v18 = vmax.f32 %v276_v10, 0.0  ;;  %v404_v48 = vmax.f32 %v386_v11, 0.0 }
  0xea   :  { %v293_v21 = vmax.f32 %v271_v15, 0.0  ;;  %v962_v22 = vpop.f32.mrb[2].mxu1  ;;  %v972_v23 = vpop.f32.mrb[6].mxu0  ;;  %v403_v54 = vmax.f32 %v381_v16, 0.0 }
  0xeb   :  { %v298_v24 = vadd.f32 %v294_v18, %v290_v14  ;;  %v286_v25 = vadd.f32 %v962_v22, %v180_v17  ;;  %v396_v26 = vadd.f32 %v972_v23, %v180_v17  ;;  %v280_v27 = vpop.f32.mrb[3].mxu1  ;;  %v390_v28 = vpop.f32.mrb[7].mxu0 }
  0xec   :  { %v297_v29 = vadd.f32 %v293_v21, %v289_v19  ;;  %v281_v31 = vadd.f32 %v280_v27, %v175_v20  ;;  %v391_v32 = vadd.f32 %v390_v28, %v175_v20 }
  0xed   :  { %303 = vst.msk [vmem:[#allocation2 + $0x8] sm:$0xff] %vm39_vm3, %v298_v24  ;;  %v296_v33 = vmax.f32 %v286_v25, 0.0  ;;  %v406_v62 = vmax.f32 %v396_v26, 0.0 }
  0xee   :  { %302 = vst.msk [vmem:[#allocation2] sm:$0xff] %vm39_vm3, %v297_v29  ;;  %v295_v35 = vmax.f32 %v281_v31, 0.0  ;;  %v979_v36 = vpop.f32.mrb[4].mxu1  ;;  %v989_v37 = vpop.f32.mrb[8].mxu0  ;;  %v405_v2 = vmax.f32 %v391_v32, 0.0 }
  0xef   :  { %v300_v38 = vadd.f32 %v296_v33, %v292_v30  ;;  %v495_v39 = vadd.f32 %v979_v36, %v170_v5  ;;  %v604_v40 = vadd.f32 %v989_v37, %v170_v5  ;;  %v489_v41 = vpop.f32.mrb[5].mxu1  ;;  %v598_v42 = vpop.f32.mrb[9].mxu0 }
  0xf0   :  { %v299_v43 = vadd.f32 %v295_v35, %v291_v34  ;;  %v490_v44 = vadd.f32 %v489_v41, %v1231_v7  ;;  %v599_v45 = vadd.f32 %v598_v42, %v1231_v7 }
  0xf1   :  { %305 = vst.msk [vmem:[#allocation2 + $0x18] sm:$0xff] %vm39_vm3, %v300_v38  ;;  %v513_v13 = vmax.f32 %v495_v39, 0.0 }
  0xf2   :  { %304 = vst.msk [vmem:[#allocation2 + $0x10] sm:$0xff] %vm39_vm3, %v299_v43  ;;  %v982_v46 = vpop.f32.mrb[6].mxu1  ;;  %v992_v47 = vpop.f32.mrb[10].mxu0  ;;  %v512_v14 = vmax.f32 %v490_v44, 0.0  ;;  %v621_v25 = vmax.f32 %v599_v45, 0.0 }
  0xf3   :  { %v505_v49 = vadd.f32 %v982_v46, %v180_v17  ;;  %v614_v50 = vadd.f32 %v992_v47, %v180_v17  ;;  %v499_v51 = vpop.f32.mrb[7].mxu1  ;;  %v608_v52 = vpop.f32.mrb[11].mxu0 }
  0xf4   :  { %v400_v53 = vld [vmem:[#allocation2 + $0x8] sm:$0xff]  ;;  %v500_v55 = vadd.f32 %v499_v51, %v175_v20  ;;  %v609_v56 = vadd.f32 %v608_v52, %v175_v20 }
  0xf5   :  { %v408_v57 = vadd.f32 %v404_v48, %v400_v53  ;;  %v399_v58 = vld [vmem:[#allocation2] sm:$0xff]  ;;  %v624_v29 = vmax.f32 %v614_v50, 0.0 }
  0xf6   :  { %v407_v59 = vadd.f32 %v403_v54, %v399_v58  ;;  %v999_v60 = vpop.f32.mrb[8].mxu1  ;;  %v514_v21 = vmax.f32 %v500_v55, 0.0  ;;  %v623_v31 = vmax.f32 %v609_v56, 0.0  ;;  %v834_v58 = vlaneseq }
  0xf7   :  { %412 = vst.msk [vmem:[#allocation2 + $0x8] sm:$0xff] %vm39_vm3, %v408_v57  ;;  %v713_v63 = vadd.f32 %v999_v60, %v170_v5  ;;  %v707_v0 = vpop.f32.mrb[9].mxu1  ;;  %v753_v57 = vld [vmem:[%s1281_s7] sm:$0xff] }
  0xf8   :  { %411 = vst.msk [vmem:[#allocation2] sm:$0xff] %vm39_vm3, %v407_v59  ;;  %v402_v1 = vld [vmem:[#allocation2 + $0x18] sm:$0xff]  ;;  %v708_v3 = vadd.f32 %v707_v0, %v1231_v7  ;;  %v515_v7 = vmax.f32 %v505_v49, 0.0  ;;  %v835_v59 = vshrl.u32 %v834_v58, 7 }
  0xf9   :  { %v410_v4 = vadd.f32 %v406_v62, %v402_v1  ;;  %v401_v6 = vld [vmem:[#allocation2 + $0x10] sm:$0xff]  ;;  %v731_v35 = vmax.f32 %v713_v63, 0.0  ;;  %v832_v62 = vpop.permute.xlu0 %831 }
  0xfa   :  { %v409_v8 = vadd.f32 %v405_v2, %v401_v6  ;;  %v1002_v9 = vpop.f32.mrb[10].mxu1  ;;  %v730_v37 = vmax.f32 %v708_v3, 0.0  ;;  %v836_v60 = vsub.s32 0, %v835_v59 }
  0xfb   :  { %414 = vst.msk [vmem:[#allocation2 + $0x18] sm:$0xff] %vm39_vm3, %v410_v4  ;;  %v723_v10 = vadd.f32 %v1002_v9, %v180_v17  ;;  %v717_v11 = vpop.f32.mrb[11].mxu1 }
  0xfc   :  { %413 = vst.msk [vmem:[#allocation2 + $0x10] sm:$0xff] %vm39_vm3, %v409_v8  ;;  %v718_v12 = vadd.f32 %v717_v11, %v175_v20  ;;  %v622_v20 = vmax.f32 %v604_v40, 0.0  ;;  %v837_v63 = vrot.slane %v832_v62, %v836_v60 }
  0xfd   :  { %v733_v41 = vmax.f32 %v723_v10, 0.0 }
  0xfe   :  { %v509_v5 = vld [vmem:[#allocation2 + $0x8] sm:$0xff]  ;;  %v732_v43 = vmax.f32 %v718_v12, 0.0 }
  0xff   :  { %v517_v15 = vadd.f32 %v513_v13, %v509_v5  ;;  %v508_v16 = vld [vmem:[#allocation2] sm:$0xff] }
 0x100   :  { %v516_v18 = vadd.f32 %v512_v14, %v508_v16 }
 0x101   :  { %521 = vst.msk [vmem:[#allocation2 + $0x8] sm:$0xff] %vm39_vm3, %v517_v15 }
 0x102   :  { %520 = vst.msk [vmem:[#allocation2] sm:$0xff] %vm39_vm3, %v516_v18  ;;  %v511_v19 = vld [vmem:[#allocation2 + $0x18] sm:$0xff] }
 0x103   :  { %v519_v22 = vadd.f32 %v515_v7, %v511_v19  ;;  %v510_v23 = vld [vmem:[#allocation2 + $0x10] sm:$0xff] }
 0x104   :  { %v518_v17 = vadd.f32 %v514_v21, %v510_v23 }
 0x105   :  { %523 = vst.msk [vmem:[#allocation2 + $0x18] sm:$0xff] %vm39_vm3, %v519_v22 }
 0x106   :  { %522 = vst.msk [vmem:[#allocation2 + $0x10] sm:$0xff] %vm39_vm3, %v518_v17 }
 0x108   :  { %v618_v24 = vld [vmem:[#allocation2 + $0x8] sm:$0xff] }
 0x109   :  { %v626_v26 = vadd.f32 %v622_v20, %v618_v24  ;;  %v617_v27 = vld [vmem:[#allocation2] sm:$0xff] }
 0x10a   :  { %v625_v28 = vadd.f32 %v621_v25, %v617_v27 }
 0x10b   :  { %630 = vst.msk [vmem:[#allocation2 + $0x8] sm:$0xff] %vm39_vm3, %v626_v26 }
 0x10c   :  { %629 = vst.msk [vmem:[#allocation2] sm:$0xff] %vm39_vm3, %v625_v28  ;;  %v620_v30 = vld [vmem:[#allocation2 + $0x18] sm:$0xff] }
 0x10d   :  { %v628_v32 = vadd.f32 %v624_v29, %v620_v30  ;;  %v619_v33 = vld [vmem:[#allocation2 + $0x10] sm:$0xff] }
 0x10e   :  { %v627_v34 = vadd.f32 %v623_v31, %v619_v33 }
 0x10f   :  { %632 = vst.msk [vmem:[#allocation2 + $0x18] sm:$0xff] %vm39_vm3, %v628_v32 }
 0x110   :  { %631 = vst.msk [vmem:[#allocation2 + $0x10] sm:$0xff] %vm39_vm3, %v627_v34 }
 0x112   :  { %v727_v36 = vld [vmem:[#allocation2 + $0x8] sm:$0xff] }
 0x113   :  { %v735_v38 = vadd.f32 %v731_v35, %v727_v36  ;;  %v726_v39 = vld [vmem:[#allocation2] sm:$0xff] }
 0x114   :  { %v734_v40 = vadd.f32 %v730_v37, %v726_v39 }
 0x115   :  { %739 = vst.msk [vmem:[#allocation2 + $0x8] sm:$0xff] %vm39_vm3, %v735_v38 }
 0x116   :  { %738 = vst.msk [vmem:[#allocation2] sm:$0xff] %vm39_vm3, %v734_v40  ;;  %v729_v42 = vld [vmem:[#allocation2 + $0x18] sm:$0xff] }
 0x117   :  { %v737_v44 = vadd.f32 %v733_v41, %v729_v42  ;;  %v728_v45 = vld [vmem:[#allocation2 + $0x10] sm:$0xff] }
 0x118   :  { %v736_v46 = vadd.f32 %v732_v43, %v728_v45 }
 0x119   :  { %741 = vst.msk [vmem:[#allocation2 + $0x18] sm:$0xff] %vm39_vm3, %v737_v44 }
 0x11a   :  { %740 = vst.msk [vmem:[#allocation2 + $0x10] sm:$0xff] %vm39_vm3, %v736_v46 }
 0x11c   :  { %v746_v47 = vld [vmem:[#allocation2 + $0x8] sm:$0xff] }
 0x11d   :  { %v745_v48 = vld [vmem:[#allocation2] sm:$0xff]  ;;  %v750_v49 = vmul.f32 0.2, %v746_v47 }
 0x11e   :  { %v749_v50 = vmul.f32 0.2, %v745_v48 }
 0x120   :  { %v1035_v51 = vpack.c.bf16 %v750_v49, %v749_v50  ;;  %v748_v52 = vld [vmem:[#allocation2 + $0x18] sm:$0xff] }
 0x121   :  { %v747_v53 = vld [vmem:[#allocation2 + $0x10] sm:$0xff]  ;;  %v752_v54 = vmul.f32 0.2, %v748_v52 }
 0x122   :  { %1036 = vmatpush3.bf16.msra.mxu0 %v1035_v51  ;;  %v751_v55 = vmul.f32 0.2, %v747_v53 }
 0x123   :  { %1037 = vmatprep.subr.bf16.mxu0 %v1073_v61 }
 0x124   :  { %v1038_v56 = vpack.c.bf16 %v752_v54, %v751_v55 }
 0x126   :  { %1039 = vmatpush3.bf16.msra.mxu0 %v1038_v56 }
 0x129   :  { %1012 = vmatmul.mubr.msk.f32.vlgmr.msra.gmra.mrb[12].mxu0 %vm754_vm5, %v753_v57 }
 0x1fc   :  { %v824_v0 = vpop.f32.mrb[12].mxu0 }
 0x1fd   :  { %v838_v1 = vadd.f32 %v837_v63, %v824_v0  ;;  %v1013_v2 = vpop.f32.mrb[13].mxu0 }
 0x1ff   :  { %840 = vst.msk [vmem:[#allocation4] sm:$0x1] %vm839_vm6, %v838_v1 }
 0x200   :  { %1058 = shalt.err (!%p1055_p4)
}
 0x201   :  { %s1059_s30 = scalar_lea.hbm %s1283_s9, 16 }
 0x202   :  { %p1060_p5 = scmp.ne.s32.totalorder %s1283_s9, %s1059_s30  ;;  %p1063_p6 = scmp.lt.u32.totalorder %s1059_s30, %s1283_s9 }
 0x204   :  { %p1065_p7 = pnand %p1063_p6, %p1060_p5 }
 0x206   :  { %1068 = shalt.err (!%p1065_p7)
}
 0x207   :  { %850 = dma.vmem_to_hbm [thread:$0]  %s848_s1, 16, %s1283_s9, [#allocation5]  }
 0x208   :  { %1069 = dma.done.wait [#allocation5], 16  }
 0x209   :  { %1070 = vsyncadd [#allocation5], 4294967280 }
 0x20a   :  { %854 = vsyncpa [#allocation5], 1 }

</bundles_post_ra>
